<compile_context>
chip_gen: v5e
topology: v5e:2x2
jax: 0.10.0
libtpu: 0.0.40
codegen_flags: <defaults>
</compile_context>

<pallas_src>
import math

import jax
import jax.numpy as jnp
import numpy as np
from jax.experimental import pallas as pl
from jax.experimental.pallas import tpu as pltpu


def _pe_add_kernel(cx_ref, cy_ref, ph_ref, px_ref, py_ref, x_ref, o_ref, pe_ref):
    """Grid = (C_blocks, HW_blocks, N).

    INVARIANT: the batch axis n must be the innermost, sequentially executed
    ("arbitrary") grid axis.  The PE cache in `pe_ref` is recomputed only when
    n wraps to 0 for the current (channel-block, hw-block); reordering the grid
    or marking n "parallel" would leave the scratch stale/uninitialized.
    """
    n = pl.program_id(2)

    @pl.when(n == 0)
    def _():
        # (c_blk, 1) * (1, hw_blk) broadcast -> (c_blk, hw_blk).
        # cos(t) is sin(t + pi/2) via the per-channel phase: one transcendental
        # per element, computed in f32 and downcast once to the output dtype.
        arg = cx_ref[...] * px_ref[...] + cy_ref[...] * py_ref[...] + ph_ref[...]
        pe_ref[...] = jnp.sin(arg).astype(pe_ref.dtype)

    # Steady-state hot path: plain 2-D vld + vadd + vst (batch dim squeezed).
    o_ref[...] = x_ref[...] + pe_ref[...]


def _vmem_working_set_bytes(c_blk, hw_blk, out_itemsize):
    """Everything this kernel asks Pallas to keep resident in VMEM."""
    tile = c_blk * hw_blk
    xo_tiles = 2 * 2 * tile * out_itemsize            # x + out tiles, double-buffered
    pe_scratch = tile * out_itemsize                   # cached PE (single buffer, out dtype)
    # Constant-index inputs still get double-buffered by the pipeline; count them.
    consts = 2 * (2 * hw_blk + 3 * c_blk) * 4          # pos_x/pos_y + coef_x/coef_y/phase (f32)
    return xo_tiles + pe_scratch + consts


def _choose_blocks(C, HW, out_itemsize, budget_bytes):
    """Pick (c_blk, hw_blk) maximizing tile size within budget, preferring
    (a) a combined parallel extent >= 2 (keeps both v7x TensorCores busy),
    (b) a full-HW lane block (contiguous HBM tile), then (c) the biggest tile."""
    c_cands = sorted({cb for cb in range(8, C + 1, 8) if C % cb == 0} | {C})
    if HW % 128 == 0:
        hw_cands = sorted({hb for hb in range(128, HW + 1, 128) if HW % hb == 0})
    else:
        # TODO(synk): pad H*W to a multiple of 128 so the lane axis can be tiled
        # for pathological (huge, non-128-multiple) spatial sizes; until then
        # the full row is the only legal lane block.
        hw_cands = [HW]

    best_key, best = None, None
    for cb in c_cands:
        for hb in hw_cands:
            if _vmem_working_set_bytes(cb, hb, out_itemsize) > budget_bytes:
                continue
            key = ((C // cb) * (HW // hb) >= 2, hb == HW, cb * hb)
            if best_key is None or key > best_key:
                best_key, best = key, (cb, hb)
    if best is None:
        best = (c_cands[0], hw_cands[0])
    return best


def position_encoding_sine_norm(x, d_model, max_shape=(128, 128), donate_x=False):
    """x: [N, C, H, W] with C == d_model. Returns x + pe (same shape/dtype).

    Set donate_x=True (with the caller donating x) to alias x to the output and
    avoid a second N*C*H*W HBM allocation.
    """
    N, C, H, W = x.shape
    assert C == d_model and d_model % 4 == 0
    HW = H * W

    # --- small per-channel / per-position parameters (cheap plain-JAX glue) ---
    div_term = jnp.exp(
        jnp.arange(0, d_model // 2, 2, dtype=jnp.float32)
        * (-math.log(10000.0) / (d_model // 2))
    )                                                       # (C // 4,)
    freq = jnp.repeat(div_term, 4)                          # (C,)
    mode = jnp.arange(C, dtype=jnp.int32) % 4
    coef_x = jnp.where(mode < 2, freq, 0.0).reshape(C, 1)                       # x-pos channels
    coef_y = jnp.where(mode >= 2, freq, 0.0).reshape(C, 1)                      # y-pos channels
    phase = jnp.where(mode % 2 == 1, jnp.float32(math.pi / 2.0), 0.0).reshape(C, 1)

    # Flattened (lane-dense) 1-based positions, same op order as the reference.
    col = jnp.tile(jnp.arange(1, W + 1, dtype=jnp.float32), H)      # (HW,)
    row = jnp.repeat(jnp.arange(1, H + 1, dtype=jnp.float32), W)    # (HW,)
    pos_x = (col * float(max_shape[1]) / W).reshape(1, HW)
    pos_y = (row * float(max_shape[0]) / H).reshape(1, HW)

    x_flat = x.reshape(N, C, HW)

    # --- generation-aware VMEM sizing -----------------------------------------
    try:
        vmem_capacity = int(pltpu.get_tpu_info().vmem_capacity_bytes)
    except Exception:
        vmem_capacity = 64 * 1024 * 1024   # conservative: smallest part (v7x)
    budget_bytes = (vmem_capacity * 3) // 8  # ~24 MiB on v7x, ~48 MiB on v5e/v6e

    c_blk, hw_blk = _choose_blocks(C, HW, x.dtype.itemsize, budget_bytes)
    ws = _vmem_working_set_bytes(c_blk, hw_blk, x.dtype.itemsize)
    vmem_limit = int(min(max(ws + ws // 4 + (2 << 20), 32 << 20),
                         vmem_capacity - (16 << 20)))

    grid = (C // c_blk, HW // hw_blk, N)   # parallel, parallel, arbitrary (PE cache)

    out = pl.pallas_call(
        _pe_add_kernel,
        out_shape=jax.ShapeDtypeStruct((N, C, HW), x.dtype),
        grid_spec=pltpu.PrefetchScalarGridSpec(
            num_scalar_prefetch=0,
            grid=grid,
            in_specs=[
                pl.BlockSpec((c_blk, 1), lambda cb, hb, n: (cb, 0)),        # coef_x
                pl.BlockSpec((c_blk, 1), lambda cb, hb, n: (cb, 0)),        # coef_y
                pl.BlockSpec((c_blk, 1), lambda cb, hb, n: (cb, 0)),        # phase
                pl.BlockSpec((1, hw_blk), lambda cb, hb, n: (0, hb)),       # pos_x
                pl.BlockSpec((1, hw_blk), lambda cb, hb, n: (0, hb)),       # pos_y
                pl.BlockSpec((pl.Squeezed(), c_blk, hw_blk),
                             lambda cb, hb, n: (n, cb, hb)),                # x tile
            ],
            out_specs=pl.BlockSpec((pl.Squeezed(), c_blk, hw_blk),
                                   lambda cb, hb, n: (n, cb, hb)),
            scratch_shapes=[pltpu.VMEM((c_blk, hw_blk), x.dtype)],          # cached PE
        ),
        compiler_params=pltpu.CompilerParams(
            dimension_semantics=("parallel", "parallel", "arbitrary"),
            vmem_limit_bytes=vmem_limit,
        ),
        input_output_aliases=({5: 0} if donate_x else {}),
    )(coef_x, coef_y, phase, pos_x, pos_y, x_flat)

    return out.reshape(N, C, H, W)


def _reference(x, d_model, max_shape=(128, 128)):
    """Pure-JAX reference mirroring the PyTorch reset_pe + forward."""
    N, C, H, W = x.shape
    y_pos = (jnp.cumsum(jnp.ones((H, W), jnp.float32), axis=0))[None] * max_shape[0] / H
    x_pos = (jnp.cumsum(jnp.ones((H, W), jnp.float32), axis=1))[None] * max_shape[1] / W
    div_term = jnp.exp(
        jnp.arange(0, d_model // 2, 2, dtype=jnp.float32)
        * (-math.log(10000.0) / (d_model // 2))
    )[:, None, None]
    pe = jnp.zeros((d_model, H, W), jnp.float32)
    pe = pe.at[0::4].set(jnp.sin(x_pos * div_term))
    pe = pe.at[1::4].set(jnp.cos(x_pos * div_term))
    pe = pe.at[2::4].set(jnp.sin(y_pos * div_term))
    pe = pe.at[3::4].set(jnp.cos(y_pos * div_term))
    return x + pe[None]


if __name__ == "__main__":
    N, C, H, W = 2, 8, 16, 16  # d_model = C = 8
    key = jax.random.PRNGKey(0)
    x = jax.random.normal(key, (N, C, H, W), dtype=jnp.float32)

    out = position_encoding_sine_norm(x, d_model=C)
    out = jax.block_until_ready(out)

    ref = _reference(x, d_model=C)
    # atol absorbs the tiny fp32 rounding from folding cos(t) into sin(t + pi/2).
    np.testing.assert_allclose(np.asarray(out), np.asarray(ref), rtol=1e-5, atol=2e-5)
    print("KERNEL_OK")
</pallas_src>

<mosaic_0001>
module attributes {stable_mosaic.version = 11 : i64} {
  func.func @_pe_add_kernel(%arg0: i32, %arg1: i32, %arg2: i32, %arg3: memref<8x1xf32, #tpu.memory_space<vmem>>, %arg4: memref<8x1xf32, #tpu.memory_space<vmem>>, %arg5: memref<8x1xf32, #tpu.memory_space<vmem>>, %arg6: memref<1x128xf32, #tpu.memory_space<vmem>>, %arg7: memref<1x128xf32, #tpu.memory_space<vmem>>, %arg8: memref<1x8x128xf32, #tpu.memory_space<vmem>>, %arg9: memref<1x8x128xf32, #tpu.memory_space<vmem>>, %arg10: memref<8x128xf32, #tpu.memory_space<vmem>>) attributes {dimension_semantics = [#tpu.dimension_semantics<parallel>, #tpu.dimension_semantics<parallel>, #tpu.dimension_semantics<arbitrary>], iteration_bounds = array<i64: 1, 2, 2>, scalar_prefetch = 0 : i64, scratch_operands = 1 : i64, tpu.core_type = #tpu.core_type<tc>, window_params = [{transform_indices = @transform_0, window_bounds = array<i64: 8, 1>}, {transform_indices = @transform_1, window_bounds = array<i64: 8, 1>}, {transform_indices = @transform_2, window_bounds = array<i64: 8, 1>}, {transform_indices = @transform_3, window_bounds = array<i64: 1, 128>}, {transform_indices = @transform_4, window_bounds = array<i64: 1, 128>}, {transform_indices = @transform_5, window_bounds = array<i64: 1, 8, 128>}, {transform_indices = @transform_6, window_bounds = array<i64: 1, 8, 128>}]} {
    %c0_i32 = arith.constant 0 : i32
    %0 = arith.cmpi eq, %arg2, %c0_i32 : i32
    %1 = arith.extui %0 : i1 to i32
    %c0_i32_0 = arith.constant 0 : i32
    %2 = arith.cmpi ne, %1, %c0_i32_0 : i32
    scf.if %2 {
      %c0_8 = arith.constant 0 : index
      %c0_9 = arith.constant 0 : index
      %10 = vector.load %arg3[%c0_8, %c0_9] : memref<8x1xf32, #tpu.memory_space<vmem>>, vector<8x1xf32>
      %c0_10 = arith.constant 0 : index
      %c0_11 = arith.constant 0 : index
      %11 = vector.load %arg6[%c0_10, %c0_11] : memref<1x128xf32, #tpu.memory_space<vmem>>, vector<1x128xf32>
      %12 = vector.broadcast %10 : vector<8x1xf32> to vector<8x128xf32>
      %13 = vector.broadcast %11 : vector<1x128xf32> to vector<8x128xf32>
      %14 = arith.mulf %12, %13 : vector<8x128xf32>
      %c0_12 = arith.constant 0 : index
      %c0_13 = arith.constant 0 : index
      %15 = vector.load %arg4[%c0_12, %c0_13] : memref<8x1xf32, #tpu.memory_space<vmem>>, vector<8x1xf32>
      %c0_14 = arith.constant 0 : index
      %c0_15 = arith.constant 0 : index
      %16 = vector.load %arg7[%c0_14, %c0_15] : memref<1x128xf32, #tpu.memory_space<vmem>>, vector<1x128xf32>
      %17 = vector.broadcast %15 : vector<8x1xf32> to vector<8x128xf32>
      %18 = vector.broadcast %16 : vector<1x128xf32> to vector<8x128xf32>
      %19 = arith.mulf %17, %18 : vector<8x128xf32>
      %20 = arith.addf %14, %19 : vector<8x128xf32>
      %c0_16 = arith.constant 0 : index
      %c0_17 = arith.constant 0 : index
      %21 = vector.load %arg5[%c0_16, %c0_17] : memref<8x1xf32, #tpu.memory_space<vmem>>, vector<8x1xf32>
      %22 = vector.broadcast %21 : vector<8x1xf32> to vector<8x128xf32>
      %23 = arith.addf %20, %22 : vector<8x128xf32>
      %24 = math.sin %23 : vector<8x128xf32>
      %c0_18 = arith.constant 0 : index
      %c0_19 = arith.constant 0 : index
      %25 = vector.load %arg10[%c0_18, %c0_19] : memref<8x128xf32, #tpu.memory_space<vmem>>, vector<8x128xf32>
      tpu.vector_store %arg10[%c0_18, %c0_19], %24 {strides = array<i32>} : memref<8x128xf32, #tpu.memory_space<vmem>>, vector<8x128xf32>,
    } else {
    }
    %c0 = arith.constant 0 : index
    %c0_1 = arith.constant 0 : index
    %c0_2 = arith.constant 0 : index
    %3 = vector.load %arg8[%c0, %c0_1, %c0_2] : memref<1x8x128xf32, #tpu.memory_space<vmem>>, vector<1x8x128xf32>
    %4 = vector.shape_cast %3 : vector<1x8x128xf32> to vector<8x128xf32>
    %c0_3 = arith.constant 0 : index
    %c0_4 = arith.constant 0 : index
    %5 = vector.load %arg10[%c0_3, %c0_4] : memref<8x128xf32, #tpu.memory_space<vmem>>, vector<8x128xf32>
    %6 = arith.addf %4, %5 : vector<8x128xf32>
    %c0_5 = arith.constant 0 : index
    %c0_6 = arith.constant 0 : index
    %c0_7 = arith.constant 0 : index
    %7 = vector.load %arg9[%c0_5, %c0_6, %c0_7] : memref<1x8x128xf32, #tpu.memory_space<vmem>>, vector<1x8x128xf32>
    %8 = vector.shape_cast %7 : vector<1x8x128xf32> to vector<8x128xf32>
    %9 = vector.shape_cast %6 : vector<8x128xf32> to vector<1x8x128xf32>
    tpu.vector_store %arg9[%c0_5, %c0_6, %c0_7], %9 {strides = array<i32>} : memref<1x8x128xf32, #tpu.memory_space<vmem>>, vector<1x8x128xf32>,
    return
  }
  func.func @transform_0(%arg0: i32, %arg1: i32, %arg2: i32) -> (i32, i32) {
    %c0_i32 = arith.constant 0 : i32
    %c0_i32_0 = arith.constant 0 : i32
    return %arg0, %c0_i32 : i32, i32
  }
  func.func @transform_1(%arg0: i32, %arg1: i32, %arg2: i32) -> (i32, i32) {
    %c0_i32 = arith.constant 0 : i32
    %c0_i32_0 = arith.constant 0 : i32
    return %arg0, %c0_i32 : i32, i32
  }
  func.func @transform_2(%arg0: i32, %arg1: i32, %arg2: i32) -> (i32, i32) {
    %c0_i32 = arith.constant 0 : i32
    %c0_i32_0 = arith.constant 0 : i32
    return %arg0, %c0_i32 : i32, i32
  }
  func.func @transform_3(%arg0: i32, %arg1: i32, %arg2: i32) -> (i32, i32) {
    %c0_i32 = arith.constant 0 : i32
    %c0_i32_0 = arith.constant 0 : i32
    return %c0_i32, %arg1 : i32, i32
  }
  func.func @transform_4(%arg0: i32, %arg1: i32, %arg2: i32) -> (i32, i32) {
    %c0_i32 = arith.constant 0 : i32
    %c0_i32_0 = arith.constant 0 : i32
    return %c0_i32, %arg1 : i32, i32
  }
  func.func @transform_5(%arg0: i32, %arg1: i32, %arg2: i32) -> (i32, i32, i32) {
    %c0_i32 = arith.constant 0 : i32
    return %arg2, %arg0, %arg1 : i32, i32, i32
  }
  func.func @transform_6(%arg0: i32, %arg1: i32, %arg2: i32) -> (i32, i32, i32) {
    %c0_i32 = arith.constant 0 : i32
    return %arg2, %arg0, %arg1 : i32, i32, i32
  }
}

</mosaic_0001>

<bundles_post_ra>
// kernel: tpu_custom_call.1
= control target key start
LH: loop header
LB: loop body
LE: loop exit
PB: predicated region body
PF: predicated region fallthrough
CT: control target
= control target key end

     0   :  { %11 = vsyncpa [#allocation4], 0  ;;  %s1260_s0 = inlined_call_operand.vmem [shape: f32[8,1], index: 0, kind: input, shape index: {}]   ;;  %s1261_s1 = inlined_call_operand.vmem [shape: f32[8,1], index: 1, kind: input, shape index: {}]   ;;  %s1262_s2 = inlined_call_operand.vmem [shape: f32[8,1], index: 2, kind: input, shape index: {}]   ;;  %s1263_s3 = inlined_call_operand.vmem [shape: f32[1,256], index: 3, kind: input, shape index: {}]   ;;  %s1264_s4 = inlined_call_operand.vmem [shape: f32[1,256], index: 4, kind: input, shape index: {}]   ;;  %s1265_s5 = inlined_call_operand.hbm [shape: f32[2,8,256], index: 5, kind: input, shape index: {}]   ;;  %s1266_s6 = inlined_call_operand.hbm [shape: f32[2,8,256], index: 6, kind: output, shape index: {}]  }
   0x1   :  { %13 = vsyncpa [#allocation4 + $0x1], 0 }
   0x2   :  { %14 = vsyncpa [#allocation5], 0 }
   0x3   :  { %16 = vsyncpa [#allocation5 + $0x1], 0  ;;  %s1031_s21 = smov 0   ;;  %s1033_s22 = smov 0  }
   0x4   :  { %s1035_s23 = smov 0   ;;  %s1037_s24 = smov 0  }
   0x5   :  { %s1039_s25 = smov 0   ;;  %s1041_s26 = smov 0  }
   0x6   :  { %s1043_s27 = smov 0   ;;  %s1045_s28 = smov 0  }
   0x7 LB: > { %1271 = sst [smem:[#allocation9_spill]] %s959_s21  ;;  %s748_s29 = sadd.s32 4294967295, %s987_s28   ;;  %s987_s28 = sphi %s1045_s28, %s22_s28   ;;  %s983_s27 = sphi %s1043_s27, %s1289_s27   ;;  %s979_s26 = sphi %s1041_s26, %s1288_s26   ;;  %s975_s25 = sphi %s1039_s25, %s1287_s25   ;;  %s971_s24 = sphi %s1037_s24, %s1286_s24   ;;  %s967_s23 = sphi %s1035_s23, %s1285_s23   ;;  %s963_s22 = sphi %s1033_s22, %s1284_s22   ;;  %s959_s21 = sphi %s1031_s21, %s1283_s21  }
   0x8   : > { %s749_s30 = sadd.s32 4294967294, %s987_s28   ;;  %s34_s7 = sadd.s32 1, %s979_s26 }
   0x9   : > { %s37_s8 = sadd.s32 1, %s983_s27  ;;  %p35_p0 = scmp.ge.s32.totalorder %s34_s7, 2 }
   0xa   : > { %s182_s9 = sadd.s32 1, %s967_s23  ;;  %p189_p1 = scmp.ne.s32.totalorder %s967_s23, %s963_s22 }
   0xb   : > { %p190_p2 = scmp.eq.s32.totalorder %s987_s28, 0  ;;  %s1291_s7 = smov (%p35_p0, %s34_s7), 0 }
   0xc   : > { %1272 = sst [smem:[#allocation10_spill]] %s1291_s7  ;;  %s1293_s8 = smov (!%p35_p0, %s37_s8), %s983_s27 }
   0xd   : > { %s175_s10 = ssub.s32 %s979_s26, %s1291_s7  ;;  %p1084_p3 = por %p190_p2, %p189_p1 }
   0xe   : > { %p39_p4 = scmp.ge.s32.totalorder %s1293_s8, 2  ;;  %p195_p5 = scmp.ne.s32.totalorder %s963_s22, %s959_s21 }
   0xf   : > { %p196_p6 = scmp.eq.s32.totalorder %s748_s29, 0  ;;  %p223_p7 = scmp.eq.s32.totalorder %s748_s29, 3 }
  0x10   : > { %s1295_s8 = smov (%p39_p4, %s1293_s8), 0  ;;  %p229_p10 = scmp.eq.s32.totalorder %s749_s30, 3 }
  0x11   : > { %1274 = sst [smem:[#allocation11_spill]] %s1295_s8  ;;  %p1092_p8 = por %p196_p6, %p195_p5 }
  0x12   : > { %p1096_p9 = por %p223_p7, %p189_p1  ;;  %s178_s14 = ssub.s32 %s983_s27, %s1295_s8 }
  0x13   : > { %s179_s15 = sor.u32 %s178_s14, %s175_s10  ;;  %p1102_p12 = por %p229_p10, %p195_p5 }
  0x14   : > { %p180_p11 = scmp.eq.s32.totalorder %s179_s15, 0  ;;  %p782_p13 = scmp.lt.s32.totalorder %s987_s28, 4 }
  0x15   : > { %s1277_s16 = scalar_select %p1102_p12, 1, 0 }
  0x16   : > { %s282_s17 = sand.u32 1, %s967_s23   ;;  %s756_s20 = sshll.u32 %s979_s26, 1 }
  0x17   : > { %1278 = sst [smem:[#allocation12_spill]] %s1277_s16  ;;  %s755_s19 = sshll.u32 %s282_s17, 3 }
  0x18   : > { %s1109_s18 = scalar_select %p180_p11, %s967_s23, %s182_s9  }
  0x19   : > { %s292_s29 = sadd.s32 %s983_s27, %s756_s20  ;;  %s286_s7 = scalar_lea.vmem [#allocation3], %s755_s19 }
  0x1a   : > { %s298_s21 = sshll.u32 %s286_s7, 4  ;;  %s757_s8 = sshll.u32 %s292_s29, 3  ;;  %s299_s21 = int_to_ptr.vmem [resolvable:$true] %s298_s21 }
  0x1b   : > { %s294_s14 = scalar_lea.hbm %s1265_s5, %s757_s8  ;;  %p775_p0 = pnand %p782_p13, %p1084_p3 }
  0x1c   : > { %s296_s15 = sshll.u32 %s294_s14, 4  ;;  %p758_p1 = scmp.ge.s32.totalorder %s987_s28, 1  ;;  %s297_s15 = int_to_ptr.hbm [resolvable:$true] %s296_s15 }
  0x1d   : > { %s283_s16 = scalar_lea.sflag [#allocation4], %s282_s17  ;;  %p303_p2 = scmp.lt.s32.totalorder %s987_s28, 5 }
  0x1e   : > { %777 = dma.hbm_to_vmem [thread:$0]  (!%p775_p0), %s297_s15, 128, %s299_s21, %s283_s16  }
  0x1f   : > { %p304_p4 = pnand %p758_p1, %p303_p2 }
  0x20   : > { %s1121_s9 = sand.u32 (!%p304_p4), 1, %s963_s22  }
  0x21   : > { %307 = sbr.rel (%p304_p4) target bundleno = 292 (0x124), region = 44  ;;  %s759_s7 = sshll.u32 (!%p304_p4), %s1121_s9, 3 }
  0x22   : > { %s310_s19 = scalar_lea.sflag (!%p304_p4), [#allocation4], %s1121_s9  ;;  %s1125_s20 = scalar_lea.vmem (!%p304_p4), [#allocation3], %s759_s7 }
  0x26   : > { %950 = dma.done.wait (%p1092_p8), %s310_s19, 128  }
  0x27   : > { %952 = vsyncadd (%p1092_p8), %s310_s19, 4294967168  ;;  %p373_p3 = scmp.lt.s32.totalorder %s975_s25, 1  ;;  %s1139_s10 = scalar_lea.vmem [#allocation6], %s759_s7 }
  0x28   : > { %p761_p5 = scmp.ne.s32.totalorder %s971_s24, 0 }
  0x29   : > { %s374_s21 = scalar_select %p373_p3, %s975_s25, 1 }
  0x2a   : > { %382 = sbr.rel (%p761_p5) target bundleno = 275 (0x113), region = 52 }
  0x2b   : > { %s375_s16 = scalar_lea.vmem %s1263_s3, %s374_s21  ;;  %s378_s30 = scalar_lea.vmem %s1264_s4, %s374_s21 }
  0x2f   : > { %v383_v0 = vld [vmem:[%s1260_s0] sm:$0xff]  ;;  %v989_v2 = vmov 0   ;;  %v990_v24 = vmov 683565275   ;;  %v991_v26 = vmov 2475754826  }
  0x30   : > { %v406_v1 = vld [vmem:[%s1262_s2] sm:$0xff]  ;;  %855 = vset.pattern.permute.xlu0 %v989_v2  ;;  %856 = vset.pattern.permute.xlu1 %v989_v2  ;;  %v992_v29 = vmov 2131351028   ;;  %v993_v32 = vmov 2102212464  }
  0x31   : > { %387 = vperm.xlu0 %855, %v383_v0   ;;  %409 = vperm.xlu1 %856, %v406_v1   ;;  %v394_v3 = vld [vmem:[%s1261_s1] sm:$0xff]  ;;  %v994_v35 = vmov 920167782   ;;  %v995_v38 = vmov 1326507024  }
  0x32   : > { %v857_v5 = vld [vmem:[%s375_s16] ss:$0 sm:$0xff] }
  0x33   : > { %v858_v6 = vld [vmem:[%s378_s30] ss:$0 sm:$0xff] }
  0x39   : > { %398 = vperm.xlu0 %855, %v394_v3  }
  0xa3   : > { %v388_v4 = vpop.permute.xlu0 %387  ;;  %v410_v10 = vpop.permute.xlu1 %409 }
  0xa4   : > { %v393_v8 = vmul.f32 %v857_v5, %v388_v4 }
  0xab   : > { %v399_v7 = vpop.permute.xlu0 %398 }
  0xac   : > { %v404_v9 = vmul.f32 %v858_v6, %v399_v7 }
  0xae   : > { %v405_v11 = vadd.f32 %v404_v9, %v393_v8 }
  0xb0   : > { %v1153_v12 = vadd.f32 %v410_v10, %v405_v11 }
  0xb2   : > { %v416_v13 = vand.u32 2139095040, %v1153_v12  ;;  %v413_v16 = vand.u32 2147483647, %v1153_v12  ;;  %vm415_vm12 = vcmp.lt.s32.totalorder %v1153_v12, 0 }
  0xb4   : > { %v417_v14 = vshrl.u32 %v416_v13, 23  ;;  %v420_v18 = vand.u32 8388607, %v413_v16  ;;  %vm414_vm13 = vcmp.le.f32.partialorder %v413_v16, 0.7853982 }
  0xb6   : > { %v762_v15 = vadd.s32 4294967169, %v417_v14  ;;  %v421_v22 = vor.u32 8388608, %v420_v18 }
  0xb8   : > { %v423_v17 = vadd.s32 1, %v762_v15  ;;  %v1170_v45 = vshll.u32 %v421_v22, 8 }
  0xba   : > { %vm424_vm0 = vcmp.gt.s32.totalorder %v423_v17, 0  ;;  %v462_v54 = vand.u32 65535, %v1170_v45  ;;  %v463_v55 = vshrl.u32 %v1170_v45, 16 }
  0xbb   : > { %v425_v19 = vsel %vm424_vm0, %v423_v17, 0 }
  0xbc   : > { %v427_v20 = vand.u32 31, %v425_v19  ;;  %v1161_v23 = vshrl.u32 %v425_v19, 5 }
  0xbe   : > { %v1159_v21 = vsub.s32 32, %v427_v20  ;;  %v430_v25 = vshll.u32 %v990_v24, %v427_v20  ;;  %v433_v27 = vshll.u32 %v991_v26, %v427_v20  ;;  %v436_v31 = vshll.u32 %v992_v29, %v427_v20 }
  0xbf   : > { %v439_v34 = vshll.u32 %v993_v32, %v427_v20  ;;  %v442_v37 = vshll.u32 %v994_v35, %v427_v20  ;;  %vm445_vm1 = vcmp.lt.s32.totalorder %v1161_v23, 1  ;;  %vm448_vm2 = vcmp.lt.s32.totalorder %v1161_v23, 4 }
  0xc0   : > { %v431_v28 = vshrl.u32 %v991_v26, %v1159_v21  ;;  %v434_v30 = vshrl.u32 %v992_v29, %v1159_v21  ;;  %v437_v33 = vshrl.u32 %v993_v32, %v1159_v21  ;;  %v440_v36 = vshrl.u32 %v994_v35, %v1159_v21 }
  0xc1   : > { %v443_v39 = vshrl.u32 %v995_v38, %v1159_v21  ;;  %vm447_vm3 = vcmp.lt.s32.totalorder %v1161_v23, 3  ;;  %vm446_vm4 = vcmp.lt.s32.totalorder %v1161_v23, 2  ;;  %v429_v19 = vshrl.u32 %v990_v24, %v1159_v21 }
  0xc2   : > { %v432_v40 = vor.u32 %v431_v28, %v430_v25  ;;  %v435_v41 = vor.u32 %v434_v30, %v433_v27  ;;  %v438_v42 = vor.u32 %v437_v33, %v436_v31  ;;  %v441_v43 = vor.u32 %v440_v36, %v439_v34 }
  0xc3   : > { %v444_v44 = vor.u32 %v443_v39, %v442_v37 }
  0xc4   : > { %v453_v46 = vsel %vm445_vm1, %v432_v40, %v435_v41  ;;  %v457_v47 = vsel %vm445_vm1, %v435_v41, %v438_v42  ;;  %v454_v48 = vsel %vm448_vm2, %v441_v43, 920167782  ;;  %v450_v15 = vsel %vm448_vm2, %v438_v42, 2102212464 }
  0xc5   : > { %v458_v49 = vsel %vm448_vm2, %v444_v44, 1326507024  ;;  %v455_v50 = vsel %vm447_vm3, %v438_v42, %v454_v48  ;;  %v449_v28 = vsel %vm445_vm1, %v429_v19, %v432_v40  ;;  %v451_v29 = vsel %vm447_vm3, %v435_v41, %v450_v15 }
  0xc6   : > { %v459_v51 = vsel %vm447_vm3, %v441_v43, %v458_v49  ;;  %v456_v52 = vsel %vm446_vm4, %v453_v46, %v455_v50  ;;  %v452_v21 = vsel %vm446_vm4, %v449_v28, %v451_v29  ;;  %vm556_vm1 = vweird.f32 %v1153_v12 }
  0xc7   : > { %v460_v53 = vsel %vm446_vm4, %v457_v47, %v459_v51  ;;  %v486_v58 = vand.u32 65535, %v456_v52  ;;  %v487_v59 = vshrl.u32 %v456_v52, 16  ;;  %v506_v36 = vmul.u32 %v1170_v45, %v452_v21 }
  0xc8   : > { %v464_v56 = vand.u32 65535, %v460_v53  ;;  %v465_v57 = vshrl.u32 %v460_v53, 16 }
  0xc9   : > { %v489_v62 = vmul.u32 %v487_v59, %v462_v54  ;;  %v490_v63 = vmul.u32 %v486_v58, %v463_v55  ;;  %v488_v4 = vmul.u32 %v486_v58, %v462_v54  ;;  %v491_v8 = vmul.u32 %v487_v59, %v463_v55 }
  0xca   : > { %v467_v60 = vmul.u32 %v465_v57, %v462_v54  ;;  %v468_v61 = vmul.u32 %v464_v56, %v463_v55  ;;  %v466_v0 = vmul.u32 %v464_v56, %v462_v54  ;;  %v469_v3 = vmul.u32 %v465_v57, %v463_v55 }
  0xcb   : > { %v492_v5 = vshll.u32 %v489_v62, 16  ;;  %v494_v10 = vshll.u32 %v490_v63, 16  ;;  %v493_v26 = vshrl.u32 %v489_v62, 16  ;;  %v495_v32 = vshrl.u32 %v490_v63, 16 }
  0xcc   : > { %v470_v1 = vshll.u32 %v467_v60, 16  ;;  %v472_v6 = vshll.u32 %v468_v61, 16  ;;  %v471_v20 = vshrl.u32 %v467_v60, 16  ;;  %v473_v30 = vshrl.u32 %v468_v61, 16 }
  0xcd   : > { %vm496_vm6 = vc.u32 %v488_v4, %v492_v5  ;;  %v498_v11 = vadd.s32 %v492_v5, %v488_v4 }
  0xce   : > { %vm474_vm5 = vc.u32 %v466_v0, %v470_v1  ;;  %v476_v7 = vadd.s32 %v470_v1, %v466_v0  ;;  %v497_v14 = vsel %vm496_vm6, 1, %v989_v2 }
  0xcf   : > { %v475_v9 = vsel %vm474_vm5, 1, %v989_v2  ;;  %v499_v18 = vadd.s32 %v497_v14, %v491_v8  ;;  %vm500_vm8 = vc.u32 %v498_v11, %v494_v10  ;;  %v502_v35 = vadd.s32 %v498_v11, %v494_v10 }
  0xd0   : > { %v477_v13 = vadd.s32 %v475_v9, %v469_v3  ;;  %vm478_vm7 = vc.u32 %v476_v7, %v472_v6  ;;  %v501_v25 = vsel %vm500_vm8, 1, %v989_v2 }
  0xd1   : > { %v479_v17 = vsel %vm478_vm7, 1, %v989_v2  ;;  %v503_v27 = vadd.s32 %v501_v25, %v499_v18 }
  0xd2   : > { %v481_v22 = vadd.s32 %v479_v17, %v477_v13 }
  0xd3   : > { %v504_v33 = vadd.s32 %v503_v27, %v493_v26 }
  0xd4   : > { %v482_v31 = vadd.s32 %v481_v22, %v471_v20 }
  0xd5   : > { %v505_v24 = vadd.s32 %v504_v33, %v495_v32 }
  0xd6   : > { %v483_v34 = vadd.s32 %v482_v31, %v473_v30 }
  0xd7   : > { %v509_v2 = vadd.s32 1, %v505_v24 }
  0xd8   : > { %vm508_vm9 = vc.u32 %v483_v34, %v502_v35  ;;  %v507_v23 = vadd.s32 %v502_v35, %v483_v34 }
  0xd9   : > { %v510_v37 = vsel %vm508_vm9, %v509_v2, %v505_v24 }
  0xda   : > { %v511_v38 = vadd.s32 %v510_v37, %v506_v36 }
  0xdc   : > { %v512_v39 = vadd.s32 536870912, %v511_v38 }
  0xde   : > { %v513_v40 = vshrl.u32 %v512_v39, 30 }
  0xe0   : > { %v514_v42 = vshll.u32 %v513_v40, 30  ;;  %v537_v61 = vsub.s32 4, %v513_v40 }
  0xe2   : > { %v515_v41 = vsub.s32 %v511_v38, %v514_v42  ;;  %v538_v3 = vsel %vm415_vm12, %v537_v61, %v513_v40 }
  0xe3   : > { %v540_v6 = vsel %vm414_vm13, 0, %v538_v3 }
  0xe4   : > { %vm516_vm10 = vcmp.lt.s32.totalorder %v515_v41, 0  ;;  %v517_v43 = vsub.s32 0, %v515_v41  ;;  %v557_v11 = vadd.s32 3, %v540_v6 }
  0xe6   : > { %v518_v44 = vsel %vm516_vm10, %v517_v43, %v515_v41  ;;  %v558_v17 = vand.u32 3, %v557_v11 }
  0xe7   : > { %v519_v46 = vclz %v518_v44 }
  0xe8   : > { %vm560_vm14 = vcmp.eq.s32.totalorder %v558_v17, 0  ;;  %vm563_vm15 = vcmp.eq.s32.totalorder %v558_v17, 2  ;;  %vm559_vm0 = vcmp.lt.s32.totalorder %v558_v17, 2 }
  0xe9   : > { %v763_v47 = vadd.s32 4294967294, %v519_v46 }
  0xeb   : > { %vm764_vm11 = vcmp.lt.s32.totalorder %v763_v47, 0 }
  0xec   : > { %v522_v48 = vsel %vm764_vm11, 0, %v763_v47 }
  0xed   : > { %v523_v49 = vsub.s32 32, %v522_v48  ;;  %v527_v50 = vsub.s32 4294967266, %v522_v48  ;;  %v524_v51 = vshll.u32 %v515_v41, %v522_v48 }
  0xef   : > { %v525_v52 = vshrl.u32 %v507_v23, %v523_v49  ;;  %v528_v53 = vadd.s32 127, %v527_v50 }
  0xf1   : > { %v526_v45 = vor.u32 %v525_v52, %v524_v51  ;;  %v529_v54 = vshll.u32 %v528_v53, 23 }
  0xf3   : > { %v530_v55 = vor.u32 4788187, %v529_v54  ;;  %v533_v57 = vcvt.s32.f32 %v526_v45 }
  0xf5   : > { %v531_v56 = vand.u32 2147483647, %v530_v55 }
  0xf7   : > { %v534_v58 = vmul.f32 %v533_v57, %v531_v56 }
  0xf9   : > { %v535_v59 = vxor.u32 2147483648, %v534_v58 }
  0xfb   : > { %v536_v60 = vsel %vm415_vm12, %v535_v59, %v534_v58 }
  0xfc   : > { %v539_v62 = vsel %vm414_vm13, %v1153_v12, %v536_v60 }
  0xfd   : > { %v541_v63 = vmul.f32 %v539_v62, %v539_v62 }
  0xff   : > { %v542_v0 = vmul.f32 -0.001358992, %v541_v63  ;;  %v549_v1 = vmul.f32 -0.00019511016, %v541_v63 }
 0x101   : > { %v543_v4 = vadd.f32 0.041655596, %v542_v0  ;;  %v550_v5 = vadd.f32 0.008332121, %v549_v1 }
 0x103   : > { %v544_v7 = vmul.f32 %v543_v4, %v541_v63  ;;  %v551_v8 = vmul.f32 %v550_v5, %v541_v63 }
 0x105   : > { %v545_v9 = vadd.f32 -0.4999988, %v544_v7  ;;  %v552_v10 = vadd.f32 -0.16666654, %v551_v8 }
 0x107   : > { %v546_v13 = vmul.f32 %v545_v9, %v541_v63  ;;  %v553_v14 = vmul.f32 %v552_v10, %v541_v63 }
 0x109   : > { %v547_v15 = vadd.f32 1.0, %v546_v13  ;;  %v554_v16 = vadd.f32 1.0, %v553_v14 }
 0x10b   : > { %v555_v18 = vmul.f32 %v554_v16, %v539_v62  ;;  %v564_v19 = vxor.u32 2147483648, %v547_v15 }
 0x10d   : > { %v561_v20 = vxor.u32 2147483648, %v555_v18  ;;  %v565_v25 = vsel %vm563_vm15, %v564_v19, %v555_v18 }
 0x10f   : > { %v562_v22 = vsel %vm560_vm14, %v547_v15, %v561_v20 }
 0x110   : > { %v566_v26 = vsel %vm559_vm0, %v562_v22, %v565_v25 }
 0x111   : > { %v567_v27 = vsel %vm556_vm1, nan, %v566_v26 }
 0x112   : > { %568 = vst [vmem:[#allocation2] sm:$0xff] %v567_v27 }
 0x113 PF: > { %v569_v28 = vld [vmem:[%s1125_s20] sm:$0xff]  ;;  %s766_s8 = sshll.u32 %s971_s24, 1  ;;  %s590_s16 = sshll.u32 %s1139_s10, 4  ;;  %s591_s16 = int_to_ptr.vmem [resolvable:$true] %s590_s16 }
 0x114   : > { %s586_s11 = sadd.s32 %s975_s25, %s766_s8  ;;  %s574_s15 = scalar_lea.sflag [#allocation5], %s1121_s9 }
 0x115   : > { %s767_s17 = sshll.u32 %s586_s11, 3  ;;  %s909_s20 = scalar_lea.hbm %s1266_s6, 32 }
 0x116   : > { %s588_s14 = scalar_lea.hbm %s1266_s6, %s767_s17 }
 0x117   : > { %s592_s12 = sshll.u32 %s588_s14, 4  ;;  %s593_s12 = int_to_ptr.hbm [resolvable:$true] %s592_s12 }
 0x118   : > { %s903_s19 = sshra.s32 %s593_s12, 4  ;;  %s904_s19 = int_to_ptr.hbm [resolvable:$true] %s903_s19 }
 0x119   : > { %v570_v29 = vld [vmem:[#allocation2] sm:$0xff]  ;;  %s905_s7 = scalar_lea.hbm %s904_s19, 8  ;;  %p910_p10 = scmp.lt.s32.totalorder %s904_s19, %s1266_s6 }
 0x11a   : > { %v571_v30 = vadd.f32 %v570_v29, %v569_v28  ;;  %p906_p6 = scmp.ne.s32.totalorder %s904_s19, %s905_s7  ;;  %p911_p11 = scmp.lt.s32.totalorder %s909_s20, %s905_s7 }
 0x11c   : > { %572 = vst [vmem:[%s1139_s10] sm:$0xff] %v571_v30  ;;  %p907_p7 = pnand %p906_p6, %p1096_p9  ;;  %p912_p13 = por %p911_p11, %p910_p10 }
 0x11e   : > { %p908_p8 = pneg %p907_p7 }
 0x120   : > { %p913_p0 = pnand %p912_p13, %p908_p8 }
 0x122   : > { %916 = shalt.err (!%p913_p0)
}
 0x123   : > { %772 = dma.vmem_to_hbm [thread:$0]  (%p1096_p9), %s591_s16, 128, %s593_s12, %s574_s15  }
 0x124 PF: > { %s1279_s9 = sld [smem:[#allocation9_spill]]  ;;  %p783_p1 = scmp.ge.s32.totalorder %s987_s28, 2 }
 0x126   : > { %p779_p2 = pnand %p783_p1, %p1102_p12 }
 0x128   : > { %p780_p4 = pneg %p779_p2 }
 0x12a   : > { %s604_s11 = sand.u32 1, %s1279_s9  }
 0x12b   : > { %s605_s17 = scalar_lea.sflag [#allocation5], %s604_s11 }
 0x12c   : > { %954 = dma.done.wait (%p780_p4), %s605_s17, 128  }
 0x12d   : > { %956 = vsyncadd (%p780_p4), %s605_s17, 4294967168  ;;  %s22_s28 = sadd.s32 1, %s987_s28   ;;  %s1281_s13 = sld [smem:[#allocation10_spill]] }
 0x12e   : > { %p19_p3 = scmp.ge.s32.totalorder %s22_s28, 6   ;;  %s1282_s16 = sld [smem:[#allocation11_spill]] }
 0x12f   : > { %s1283_s21 = smov %s963_s22  ;;  %s1284_s22 = smov %s967_s23 }
 0x130   : > { %s1285_s23 = smov %s1109_s18  ;;  %s1286_s24 = smov %s979_s26 }
 0x131   : > { %s1287_s25 = smov %s983_s27  ;;  %21 = sbr.rel (!%p19_p3) target bundleno = 7 (0x7), region = 108 }
 0x133   : > { %s1288_s26 = smov %s1281_s13 }
 0x134   : > { %s1289_s27 = smov %s1282_s16 }
 0x136   :  { %611 = vsyncpa [#allocation4], 1 }
 0x137   :  { %613 = vsyncpa [#allocation4 + $0x1], 1 }
 0x138   :  { %614 = vsyncpa [#allocation5], 1 }
 0x139   :  { %616 = vsyncpa [#allocation5 + $0x1], 1 }

</bundles_post_ra>
